<compile_context>
chip_gen: v5e
topology: v5e:2x2
jax: 0.10.0
libtpu: 0.0.40
codegen_flags: <defaults>
</compile_context>

<pallas_src>
import functools

import jax
import jax.numpy as jnp
from jax.experimental import pallas as pl
from jax.experimental.pallas import tpu as pltpu

LANE = 128  # TPU lane width; pad output columns so stores are lane-dense.


def _round_up(n, m):
    return ((n + m - 1) // m) * m


def mlp_kernel(x_ref, w1_ref, b1_ref, w2_ref, b2_ref, w3_ref, b3_ref, o_ref):
    # One batch tile per grid step; weights/biases are VMEM-resident.
    x = x_ref[...].astype(jnp.bfloat16)
    # affine1 -> tanh
    h = jnp.dot(x, w1_ref[...], preferred_element_type=jnp.float32)
    h = jnp.tanh(h + b1_ref[...])
    # affine2 -> tanh
    h = jnp.dot(h.astype(jnp.bfloat16), w2_ref[...],
                preferred_element_type=jnp.float32)
    h = jnp.tanh(h + b2_ref[...])
    # affine3 (no activation); output last dim is padded to a multiple of 128
    # so this is a full-lane (unmasked) store.
    y = jnp.dot(h.astype(jnp.bfloat16), w3_ref[...],
                preferred_element_type=jnp.float32)
    o_ref[...] = (y + b3_ref[...]).astype(o_ref.dtype)


@functools.partial(jax.jit, static_argnames=("max_tile_b",))
def net_forward(x, params, *, max_tile_b=1024):
    """Pallas forward pass of Net: tanh(L1) -> tanh(L2) -> L3."""
    w1, b1, w2, b2, w3, b3 = params
    B, num_inputs = x.shape
    H = w1.shape[1]
    num_outputs = w3.shape[1]

    # ---- wrapper-side operand prep (done once) ------------------------------
    w1 = w1.astype(jnp.bfloat16)
    w2 = w2.astype(jnp.bfloat16)
    w3 = w3.astype(jnp.bfloat16)
    b1 = b1.reshape(1, H).astype(jnp.float32)
    b2 = b2.reshape(1, H).astype(jnp.float32)

    # Lane-dense output: pad the final layer to a multiple of 128 columns.
    n_pad = _round_up(max(num_outputs, LANE), LANE)
    w3p = jnp.zeros((H, n_pad), jnp.bfloat16).at[:, :num_outputs].set(w3)
    b3p = jnp.zeros((1, n_pad), jnp.float32).at[:, :num_outputs].set(
        b3.reshape(1, num_outputs).astype(jnp.float32))

    # Batch tiling: big tiles amortize the ~0.35us/grid-step overhead.
    # VMEM footprint (double-buffered x tile + out tile + resident weights)
    # is tiny at these feature sizes: well under the 32 MiB scoped default
    # and the v7x 64 MiB physical VMEM.
    tile_b = min(max_tile_b, _round_up(B, 8))
    b_pad = _round_up(B, tile_b)
    if b_pad != B:
        x = jnp.pad(x, ((0, b_pad - B), (0, 0)))
    grid = (b_pad // tile_b,)

    resident = lambda a: pl.BlockSpec(a.shape, lambda i: (0,) * a.ndim)

    out = pl.pallas_call(
        mlp_kernel,
        out_shape=jax.ShapeDtypeStruct((b_pad, n_pad), jnp.float32),
        grid=grid,
        in_specs=[
            pl.BlockSpec((tile_b, num_inputs), lambda i: (i, 0)),  # x streamed
            resident(w1), resident(b1),
            resident(w2), resident(b2),
            resident(w3p), resident(b3p),
        ],
        out_specs=pl.BlockSpec((tile_b, n_pad), lambda i: (i, 0)),
        compiler_params=pltpu.CompilerParams(
            dimension_semantics=("parallel",)),  # megacore split on v7x
    )(x, w1, b1, w2, b2, w3p, b3p)

    return out[:B, :num_outputs]


def init_params(key, num_inputs, num_outputs, num_hidden=24):
    """Mirror Net.random_initialize: weights ~ U(-1,1), biases ~ U(0,1).
    Weights stored as (in, out) = transpose of nn.Linear's (out, in)."""
    kw1, kw2, kw3, kb1, kb2, kb3 = jax.random.split(key, 6)
    w1 = jax.random.uniform(kw1, (num_inputs, num_hidden), jnp.float32, -1.0, 1.0)
    w2 = jax.random.uniform(kw2, (num_hidden, num_hidden), jnp.float32, -1.0, 1.0)
    w3 = jax.random.uniform(kw3, (num_hidden, num_outputs), jnp.float32, -1.0, 1.0)
    b1 = jax.random.uniform(kb1, (1, num_hidden), jnp.float32, 0.0, 1.0)
    b2 = jax.random.uniform(kb2, (1, num_hidden), jnp.float32, 0.0, 1.0)
    b3 = jax.random.uniform(kb3, (1, num_outputs), jnp.float32, 0.0, 1.0)
    return (w1, b1, w2, b2, w3, b3)


def _reference(x, params):
    """Plain-JAX reference with the same bf16-operand / f32-accumulate math."""
    w1, b1, w2, b2, w3, b3 = params
    h = jnp.dot(x.astype(jnp.bfloat16), w1.astype(jnp.bfloat16),
                preferred_element_type=jnp.float32)
    h = jnp.tanh(h + b1)
    h = jnp.dot(h.astype(jnp.bfloat16), w2.astype(jnp.bfloat16),
                preferred_element_type=jnp.float32)
    h = jnp.tanh(h + b2)
    y = jnp.dot(h.astype(jnp.bfloat16), w3.astype(jnp.bfloat16),
                preferred_element_type=jnp.float32)
    return y + b3


if __name__ == "__main__":
    num_inputs, num_outputs, num_hidden, batch = 4, 2, 24, 8

    key = jax.random.PRNGKey(0)
    pkey, xkey, xkey2 = jax.random.split(key, 3)
    params = init_params(pkey, num_inputs, num_outputs, num_hidden)

    # Small batch (single grid step).
    x = jax.random.normal(xkey, (batch, num_inputs), jnp.float32)
    y = jax.block_until_ready(net_forward(x, params))
    ref = _reference(x, params)
    assert y.shape == (batch, num_outputs)
    assert jnp.allclose(y, ref, atol=5e-3, rtol=5e-3), "mismatch vs reference"

    # Larger batch to exercise the pipelined multi-step grid path.
    xb = jax.random.normal(xkey2, (2048, num_inputs), jnp.float32)
    yb = jax.block_until_ready(net_forward(xb, params))
    refb = _reference(xb, params)
    assert yb.shape == (2048, num_outputs)
    assert jnp.allclose(yb, refb, atol=5e-3, rtol=5e-3), "mismatch vs reference (big)"

    print("KERNEL_OK")
</pallas_src>

<mosaic_0001>
module attributes {stable_mosaic.version = 11 : i64} {
  func.func @mlp_kernel(%arg0: i32, %arg1: memref<8x4xf32, #tpu.memory_space<vmem>>, %arg2: memref<4x24xbf16, #tpu.memory_space<vmem>>, %arg3: memref<1x24xf32, #tpu.memory_space<vmem>>, %arg4: memref<24x24xbf16, #tpu.memory_space<vmem>>, %arg5: memref<1x24xf32, #tpu.memory_space<vmem>>, %arg6: memref<24x128xbf16, #tpu.memory_space<vmem>>, %arg7: memref<1x128xf32, #tpu.memory_space<vmem>>, %arg8: memref<8x128xf32, #tpu.memory_space<vmem>>) attributes {dimension_semantics = [#tpu.dimension_semantics<parallel>], iteration_bounds = array<i64: 1>, scalar_prefetch = 0 : i64, scratch_operands = 0 : i64, tpu.core_type = #tpu.core_type<tc>, window_params = [{transform_indices = @transform_0, window_bounds = array<i64: 8, 4>}, {pipeline_mode = #tpu.pipeline_mode<synchronous>, transform_indices = @transform_1, window_bounds = array<i64: 4, 24>}, {pipeline_mode = #tpu.pipeline_mode<synchronous>, transform_indices = @transform_2, window_bounds = array<i64: 1, 24>}, {pipeline_mode = #tpu.pipeline_mode<synchronous>, transform_indices = @transform_3, window_bounds = array<i64: 24, 24>}, {pipeline_mode = #tpu.pipeline_mode<synchronous>, transform_indices = @transform_4, window_bounds = array<i64: 1, 24>}, {pipeline_mode = #tpu.pipeline_mode<synchronous>, transform_indices = @transform_5, window_bounds = array<i64: 24, 128>}, {pipeline_mode = #tpu.pipeline_mode<synchronous>, transform_indices = @transform_6, window_bounds = array<i64: 1, 128>}, {transform_indices = @transform_7, window_bounds = array<i64: 8, 128>}]} {
    %c0 = arith.constant 0 : index
    %c0_0 = arith.constant 0 : index
    %0 = vector.load %arg1[%c0, %c0_0] : memref<8x4xf32, #tpu.memory_space<vmem>>, vector<8x4xf32>
    %1 = arith.truncf %0 : vector<8x4xf32> to vector<8x4xbf16>
    %c0_1 = arith.constant 0 : index
    %c0_2 = arith.constant 0 : index
    %2 = vector.load %arg2[%c0_1, %c0_2] : memref<4x24xbf16, #tpu.memory_space<vmem>>, vector<4x24xbf16>
    %cst = arith.constant dense<0.000000e+00> : vector<8x24xf32>
    %3 = tpu.matmul %1, %2, %cst {dimension_numbers = #tpu.dot_dimension_numbers<[1], [0], [0], [1], [0, 0, 1, 1], [], []>} : vector<8x4xbf16>, vector<4x24xbf16>, vector<8x24xf32> -> vector<8x24xf32>
    %c0_3 = arith.constant 0 : index
    %c0_4 = arith.constant 0 : index
    %4 = vector.load %arg3[%c0_3, %c0_4] : memref<1x24xf32, #tpu.memory_space<vmem>>, vector<1x24xf32>
    %5 = vector.broadcast %4 : vector<1x24xf32> to vector<8x24xf32>
    %6 = arith.addf %3, %5 : vector<8x24xf32>
    %7 = math.tanh %6 : vector<8x24xf32>
    %8 = arith.truncf %7 : vector<8x24xf32> to vector<8x24xbf16>
    %c0_5 = arith.constant 0 : index
    %c0_6 = arith.constant 0 : index
    %9 = vector.load %arg4[%c0_5, %c0_6] : memref<24x24xbf16, #tpu.memory_space<vmem>>, vector<24x24xbf16>
    %cst_7 = arith.constant dense<0.000000e+00> : vector<8x24xf32>
    %10 = tpu.matmul %8, %9, %cst_7 {dimension_numbers = #tpu.dot_dimension_numbers<[1], [0], [0], [1], [0, 0, 1, 1], [], []>} : vector<8x24xbf16>, vector<24x24xbf16>, vector<8x24xf32> -> vector<8x24xf32>
    %c0_8 = arith.constant 0 : index
    %c0_9 = arith.constant 0 : index
    %11 = vector.load %arg5[%c0_8, %c0_9] : memref<1x24xf32, #tpu.memory_space<vmem>>, vector<1x24xf32>
    %12 = vector.broadcast %11 : vector<1x24xf32> to vector<8x24xf32>
    %13 = arith.addf %10, %12 : vector<8x24xf32>
    %14 = math.tanh %13 : vector<8x24xf32>
    %15 = arith.truncf %14 : vector<8x24xf32> to vector<8x24xbf16>
    %c0_10 = arith.constant 0 : index
    %c0_11 = arith.constant 0 : index
    %16 = vector.load %arg6[%c0_10, %c0_11] : memref<24x128xbf16, #tpu.memory_space<vmem>>, vector<24x128xbf16>
    %cst_12 = arith.constant dense<0.000000e+00> : vector<8x128xf32>
    %17 = tpu.matmul %15, %16, %cst_12 {dimension_numbers = #tpu.dot_dimension_numbers<[1], [0], [0], [1], [0, 0, 1, 1], [], []>} : vector<8x24xbf16>, vector<24x128xbf16>, vector<8x128xf32> -> vector<8x128xf32>
    %c0_13 = arith.constant 0 : index
    %c0_14 = arith.constant 0 : index
    %18 = vector.load %arg7[%c0_13, %c0_14] : memref<1x128xf32, #tpu.memory_space<vmem>>, vector<1x128xf32>
    %19 = vector.broadcast %18 : vector<1x128xf32> to vector<8x128xf32>
    %20 = arith.addf %17, %19 : vector<8x128xf32>
    %c0_15 = arith.constant 0 : index
    %c0_16 = arith.constant 0 : index
    %21 = vector.load %arg8[%c0_15, %c0_16] : memref<8x128xf32, #tpu.memory_space<vmem>>, vector<8x128xf32>
    tpu.vector_store %arg8[%c0_15, %c0_16], %20 {strides = array<i32>} : memref<8x128xf32, #tpu.memory_space<vmem>>, vector<8x128xf32>,
    return
  }
  func.func @transform_0(%arg0: i32) -> (i32, i32) {
    %c0_i32 = arith.constant 0 : i32
    %c0_i32_0 = arith.constant 0 : i32
    return %arg0, %c0_i32 : i32, i32
  }
  func.func @transform_1(%arg0: i32) -> (i32, i32) {
    %c0_i32 = arith.constant 0 : i32
    %c0_i32_0 = arith.constant 0 : i32
    %c0_i32_1 = arith.constant 0 : i32
    return %c0_i32, %c0_i32_0 : i32, i32
  }
  func.func @transform_2(%arg0: i32) -> (i32, i32) {
    %c0_i32 = arith.constant 0 : i32
    %c0_i32_0 = arith.constant 0 : i32
    %c0_i32_1 = arith.constant 0 : i32
    return %c0_i32, %c0_i32_0 : i32, i32
  }
  func.func @transform_3(%arg0: i32) -> (i32, i32) {
    %c0_i32 = arith.constant 0 : i32
    %c0_i32_0 = arith.constant 0 : i32
    %c0_i32_1 = arith.constant 0 : i32
    return %c0_i32, %c0_i32_0 : i32, i32
  }
  func.func @transform_4(%arg0: i32) -> (i32, i32) {
    %c0_i32 = arith.constant 0 : i32
    %c0_i32_0 = arith.constant 0 : i32
    %c0_i32_1 = arith.constant 0 : i32
    return %c0_i32, %c0_i32_0 : i32, i32
  }
  func.func @transform_5(%arg0: i32) -> (i32, i32) {
    %c0_i32 = arith.constant 0 : i32
    %c0_i32_0 = arith.constant 0 : i32
    %c0_i32_1 = arith.constant 0 : i32
    return %c0_i32, %c0_i32_0 : i32, i32
  }
  func.func @transform_6(%arg0: i32) -> (i32, i32) {
    %c0_i32 = arith.constant 0 : i32
    %c0_i32_0 = arith.constant 0 : i32
    %c0_i32_1 = arith.constant 0 : i32
    return %c0_i32, %c0_i32_0 : i32, i32
  }
  func.func @transform_7(%arg0: i32) -> (i32, i32) {
    %c0_i32 = arith.constant 0 : i32
    %c0_i32_0 = arith.constant 0 : i32
    return %arg0, %c0_i32 : i32, i32
  }
}

</mosaic_0001>

<bundles_post_ra>
// kernel: net_forward.1
= control target key start
LH: loop header
LB: loop body
LE: loop exit
PB: predicated region body
PF: predicated region fallthrough
CT: control target
= control target key end

     0   :  { %vm38_vm0 = vcmask 1041408   ;;  %vm34_vm1 = vcmask 31744   ;;  %vm77_vm2 = vcmask 1043456   ;;  %vm73_vm3 = vcmask 195584   ;;  %s230_s1 = inlined_call_operand.vmem [shape: bf16[4,24], index: 1, kind: input, shape index: {}]   ;;  %s231_s0 = inlined_call_operand.vmem [shape: f32[8,4], index: 0, kind: input, shape index: {}]   ;;  %s232_s2 = inlined_call_operand.vmem [shape: f32[1,24], index: 2, kind: input, shape index: {}]   ;;  %s233_s4 = inlined_call_operand.vmem [shape: f32[1,24], index: 4, kind: input, shape index: {}]   ;;  %s234_s3 = inlined_call_operand.vmem [shape: bf16[24,24], index: 3, kind: input, shape index: {}]   ;;  %s235_s6 = inlined_call_operand.vmem [shape: f32[1,128], index: 6, kind: input, shape index: {}]   ;;  %s236_s5 = inlined_call_operand.vmem [shape: bf16[24,128], index: 5, kind: input, shape index: {}]   ;;  %s237_s7 = inlined_call_operand.vmem [shape: f32[8,128], index: 7, kind: output, shape index: {}]  }
   0x1   :  { %v29_v0 = vld [vmem:[%s230_s1] sm:$0x3]  ;;  %v59_v4 = vld [vmem:[%s234_s3 + $0x8] sm:$0xf] }
   0x2   :  { %v27_v1 = vld [vmem:[%s231_s0] sm:$0xff]  ;;  %v40_v2 = vsel %vm38_vm0, %v29_v0, 0  ;;  %v69_v5 = vunpack.c.l.b16 %v59_v4  ;;  %v98_v15 = vld [vmem:[%s236_s5 + $0x8] sm:$0xf] }
   0x3   :  { %v28_v3 = vpack.c.bf16 %v27_v1, %v27_v1  ;;  %49 = vmatpush.bf16.msra.mxu0 %v40_v2  ;;  %v147_v8 = vld [vmem:[%s234_s3] sm:$0xff]  ;;  %v108_v16 = vunpack.c.l.b16 %v98_v15 }
   0x4   :  { %v71_v6 = vpack.c.b16 %v69_v5, %v69_v5  ;;  %v149_v9 = vld [vmem:[%s232_s2] ss:$0 sm:$0xff] }
   0x5   :  { %v110_v17 = vpack.c.b16 %v108_v16, %v108_v16  ;;  %v148_v19 = vld [vmem:[%s236_s5] sm:$0xff] }
   0x6   :  { %136 = vmatmul.msk.bf16.vlgmr.msra.gmra.mxu0 %vm34_vm1, %v28_v3  ;;  %v79_v7 = vsel %vm77_vm2, %v71_v6, 0  ;;  %v150_v20 = vld [vmem:[%s233_s4] ss:$0 sm:$0xff] }
   0x7   :  { %87 = vmatpush.bf16.msra.mxu1 %v79_v7  ;;  %v116_v18 = vsel %vm77_vm2, %v110_v17, 0  ;;  %v151_v26 = vld [vmem:[%s235_s6] ss:$0 sm:$0xff] }
   0x8   :  { %124 = vmatpush.bf16.msra.mxu2 %v116_v18 }
   0xb   :  { %88 = vmatpush.bf16.msra.mxu1 %v147_v8 }
   0xc   :  { %125 = vmatpush.bf16.msra.mxu2 %v148_v19 }
  0x83   :  { %v51_v10 = vpop.f32.mrf.mxu0 }
  0x84   :  { %v52_v11 = vadd.f32 %v149_v9, %v51_v10 }
  0x86   :  { %152 = vtanh.f32 %v52_v11 }
  0x8b   :  { %v53_v12 = vpop.f32.mrf.mxu0 }
  0x8c   :  { %v153_v13 = vpop.eup %152 }
  0x8d   :  { %v56_v14 = vpack.c.bf16 %v153_v13, %v153_v13 }
  0x8f   :  { %141 = vmatmul.msk.bf16.vlgmr.msra.gmra.mxu1 %vm73_vm3, %v56_v14 }
 0x10c   :  { %v90_v21 = vpop.f32.mrf.mxu1 }
 0x10d   :  { %v91_v22 = vadd.f32 %v150_v20, %v90_v21 }
 0x10f   :  { %154 = vtanh.f32 %v91_v22 }
 0x114   :  { %v92_v23 = vpop.f32.mrf.mxu1 }
 0x115   :  { %v155_v24 = vpop.eup %154 }
 0x116   :  { %v95_v25 = vpack.c.bf16 %v155_v24, %v155_v24 }
 0x118   :  { %146 = vmatmul.msk.bf16.vlgmr.msra.gmra.mxu2 %vm73_vm3, %v95_v25 }
 0x19b   :  { %v127_v27 = vpop.f32.mrf.mxu2 }
 0x19c   :  { %v128_v28 = vadd.f32 %v151_v26, %v127_v27 }
 0x19e   :  { %131 = vst [vmem:[%s237_s7] sm:$0xff] %v128_v28 }
 0x1a3   :  { %v129_v29 = vpop.f32.mrf.mxu2 }

</bundles_post_ra>
